<compile_context>
chip_gen: v5e
topology: v5e:2x2
jax: 0.10.0
libtpu: 0.0.40
codegen_flags: <defaults>
</compile_context>

<pallas_src>
import functools

import jax
import jax.numpy as jnp
import numpy as np
from jax.experimental import pallas as pl
from jax.experimental.pallas import tpu as pltpu

_LANE = 128
_SUBLANE = 8
_MAX_TILE_ROWS = 1024        # upper bound on MXU M-dim fill per grid step


def _round_up(x, m):
    return (x + m - 1) // m * m


def _pick_vmem_limit(default=48 * 1024 * 1024):
    """Scoped-VMEM limit: 3/4 of physical VMEM (96 MiB v5e/v6e, 48 MiB v7x)."""
    try:
        cap = pltpu.get_tpu_info().vmem_capacity_bytes
        return int(min((cap * 3) // 4, 100 * 1024 * 1024))
    except Exception:        # info unavailable (e.g. AOT tracing off-device)
        return default


def _target_rows(hp, resident_weight_bytes, vmem_limit):
    """Activation rows per grid step supported by the VMEM budget."""
    per_row = hp * 2 * (2 + 4)            # double-buffered bf16 in + f32 out
    avail = vmem_limit - resident_weight_bytes - (4 << 20)   # headroom
    if avail <= 0:
        # TODO(synk): resident weights alone exceed the budget (e.g. H>=1536
        # on v7x's 64 MiB VMEM): split the output-hidden dim over a second
        # grid axis or stream conv weights from HBM (pl.ANY + emit_pipeline).
        return 4 * _SUBLANE
    rows = (avail // 2) // per_row        # keep half for compiler temporaries
    return int(max(_SUBLANE, min(_MAX_TILE_ROWS, rows)))


def _choose_bt(batch, seq_pad, target_rows):
    """Sequences per grid step: a divisor of batch (no wasted padded compute)."""
    cap = max(1, min(batch, target_rows // seq_pad)) if seq_pad <= target_rows else 1
    bt = max(d for d in range(1, cap + 1) if batch % d == 0)
    # Guarantee >= 2 grid steps so megacore sharding / v7x's two TensorCores
    # have work.  TODO(synk): for batch == 1 with long S, a 1-row-halo
    # S-tiling (second grid axis over sequence) would be needed instead.
    if batch >= 2 and batch // bt < 2:
        half = -(-batch // 2)
        bt = max(d for d in range(1, half + 1) if batch % d == 0)
    return bt


# --------------------------------------------------------------------------- #
# Kernel
# --------------------------------------------------------------------------- #
def _encoder_kernel(x_ref, w1_ref, w2_ref, w3_ref, wp_ref, misc_ref, o_ref, *,
                    seq_pad, seq_real, hidden_real, approximate_gelu):
    hp = w1_ref.shape[1]
    m_rows = x_ref.shape[0]

    misc = misc_ref[...]                                # (6, Hp) f32
    b1, b2, b3 = misc[0:1], misc[1:2], misc[2:3]
    bp, ln_g, ln_b = misc[3:4], misc[4:5], misc[5:6]

    # Sequence-boundary masks as (M, 1) columns (broadcast along lanes);
    # built once and reused by all three conv layers.
    pos = jax.lax.broadcasted_iota(jnp.int32, (m_rows, 1), 0) % seq_pad
    first_col = pos == 0                                # h[t-1] off the front
    last_col = pos == (seq_pad - 1)                     # h[t+1] off the back
    valid_col = None
    if seq_pad != seq_real:
        valid_col = (pos < seq_real).astype(jnp.float32)

    def gelu(v):
        return jax.nn.gelu(v, approximate=approximate_gelu)

    def conv_gelu(h, w_ref, b):
        # Conv1d(k=3, padding=1) as three accumulating MXU dots against static
        # slices of the packed (3*Hp, Hp) weight -- no (M, 3*Hp) concat.
        wd = w_ref.dtype
        h_prev = jnp.where(first_col, 0.0, pltpu.roll(h, shift=1, axis=0))
        h_next = jnp.where(last_col, 0.0, pltpu.roll(h, shift=m_rows - 1, axis=0))
        y = jnp.dot(h.astype(wd), w_ref[hp:2 * hp, :],
                    preferred_element_type=jnp.float32)
        y += jnp.dot(h_prev.astype(wd), w_ref[0:hp, :],
                     preferred_element_type=jnp.float32)
        y += jnp.dot(h_next.astype(wd), w_ref[2 * hp:3 * hp, :],
                     preferred_element_type=jnp.float32)
        y = gelu(y + b)
        if valid_col is not None:
            y = y * valid_col           # keep padded sequence rows exactly zero
        return y

    h = x_ref[...].astype(jnp.float32)                  # bf16 in, f32 math
    h = conv_gelu(h, w1_ref, b1)
    h = conv_gelu(h, w2_ref, b2)
    h = conv_gelu(h, w3_ref, b3)

    # output_projection: Linear -> GELU -> LayerNorm
    h = jnp.dot(h.astype(wp_ref.dtype), wp_ref[...],
                preferred_element_type=jnp.float32) + bp
    h = gelu(h)

    # LayerNorm over the REAL hidden width, centered (two-pass) variance.
    # Padded lanes of h are exactly 0, so sum(h)/H is exact; padded lanes of
    # (h - mean) are masked before the variance sum.
    inv_h = 1.0 / hidden_real
    mean = jnp.sum(h, axis=-1, keepdims=True) * inv_h
    d = h - mean
    if hp != hidden_real:
        lane = jax.lax.broadcasted_iota(jnp.int32, (1, hp), 1)
        d = jnp.where(lane < hidden_real, d, 0.0)
    var = jnp.sum(d * d, axis=-1, keepdims=True) * inv_h
    h = d * jax.lax.rsqrt(var + 1e-5)
    o_ref[...] = (h * ln_g + ln_b).astype(o_ref.dtype)


# --------------------------------------------------------------------------- #
# Host-side weight packing (do ONCE, reuse across calls)
# --------------------------------------------------------------------------- #
def pack_encoder_params(params, *, weight_dtype=jnp.bfloat16):
    H = params["embedding"].shape[1]
    # Lane-dense hidden pad.  NOTE: v6e/v7x MXUs are 256 wide, so an odd
    # multiple of 128 (e.g. H=384) only half-fills the N side of a pass.
    Hp = _round_up(H, _LANE)

    def pad_mat(w):                      # (H,H) -> (Hp,Hp)
        return jnp.pad(w, ((0, Hp - H), (0, Hp - H)))

    def pad_vec(v):                      # (1,H)/(H,) -> (Hp,)
        return jnp.pad(jnp.reshape(v, (-1,)), (0, Hp - H))

    def pack_conv(w3):                   # (3,H,H)[tap, in, out] -> (3Hp, Hp)
        return jnp.concatenate([pad_mat(w3[k]) for k in range(3)], axis=0)

    # TODO(synk): optional int8 weight path (per-channel scales folded into
    # the bias epilogue) would halve weight VMEM/DMA on v5e/v6e; not portable
    # to v7x (fp8-only MXU).
    return {
        "embedding": params["embedding"],
        "pos_embedding": params["pos_embedding"],
        "w1": pack_conv(params["conv1_w"]).astype(weight_dtype),
        "w2": pack_conv(params["conv2_w"]).astype(weight_dtype),
        "w3": pack_conv(params["conv3_w"]).astype(weight_dtype),
        "wp": pad_mat(params["proj_w"]).astype(weight_dtype),
        "misc": jnp.stack([pad_vec(params["conv1_b"]),
                           pad_vec(params["conv2_b"]),
                           pad_vec(params["conv3_b"]),
                           pad_vec(params["proj_b"]),
                           pad_vec(params["ln_gamma"]),
                           pad_vec(params["ln_beta"])],
                          axis=0).astype(jnp.float32),
    }


# --------------------------------------------------------------------------- #
# Wrapper
# --------------------------------------------------------------------------- #
def ane_text_encoder(input_ids, params, *, approximate_gelu=True,
                     weight_dtype=jnp.bfloat16):
    """Forward pass of ANEOptimizedTextEncoder.

    input_ids: int32 [B, S]
    params   : raw params dict or a pack_encoder_params() result (preferred:
               pack once outside the per-call path).
    returns  : float32 [B, S, H]
    """
    packed = params if "w1" in params else pack_encoder_params(
        params, weight_dtype=weight_dtype)

    B, S = input_ids.shape
    H = packed["embedding"].shape[1]
    Hp = packed["w1"].shape[1]
    Sp = _round_up(S, _SUBLANE)

    # --- plain-JAX glue ------------------------------------------------------
    # TODO(synk): embedding gather (data-dependent) stays in plain-JAX glue.
    tok = jnp.take(packed["embedding"], input_ids, axis=0)          # [B,S,H]
    pos = packed["pos_embedding"][:S][None, :, :]                   # [1,S,H]
    xb = (tok + pos).astype(jnp.bfloat16)        # bf16 activations: half DMA
    xb = jnp.pad(xb, ((0, 0), (0, Sp - S), (0, Hp - H)))            # [B,Sp,Hp]

    resident_w_bytes = int(sum(
        int(np.prod(packed[k].shape)) * jnp.dtype(packed[k].dtype).itemsize
        for k in ("w1", "w2", "w3", "wp", "misc")))
    vmem_limit = _pick_vmem_limit()

    def _launch(bt, weight_mode):
        n_steps = B // bt                          # bt always divides B
        m_blk = bt * Sp
        x2 = xb.reshape(B * Sp, Hp)
        extra = {} if weight_mode is None else {"pipeline_mode": weight_mode}
        const_spec = lambda shape: pl.BlockSpec(shape, lambda g: (0, 0), **extra)
        kernel = functools.partial(_encoder_kernel, seq_pad=Sp, seq_real=S,
                                   hidden_real=H,
                                   approximate_gelu=approximate_gelu)
        out2 = pl.pallas_call(
            kernel,
            out_shape=jax.ShapeDtypeStruct((B * Sp, Hp), jnp.float32),
            grid=(n_steps,),
            in_specs=[
                pl.BlockSpec((m_blk, Hp), lambda g: (g, 0)),   # activations
                const_spec((3 * Hp, Hp)),                      # conv1 weights
                const_spec((3 * Hp, Hp)),                      # conv2 weights
                const_spec((3 * Hp, Hp)),                      # conv3 weights
                const_spec((Hp, Hp)),                          # proj weights
                const_spec((6, Hp)),                           # biases + LN
            ],
            out_specs=pl.BlockSpec((m_blk, Hp), lambda g: (g, 0)),
            compiler_params=pltpu.CompilerParams(
                dimension_semantics=("parallel",),
                vmem_limit_bytes=vmem_limit),
        )(x2, packed["w1"], packed["w2"], packed["w3"], packed["wp"],
          packed["misc"])
        return out2.reshape(B, Sp, Hp)[:, :S, :H]

    try:
        # Constant-index weights single-buffered -> half the weight VMEM.
        bt = _choose_bt(B, Sp, _target_rows(Hp, resident_w_bytes, vmem_limit))
        return _launch(bt, pl.Buffered(1))
    except (TypeError, ValueError, NotImplementedError):
        # Pallas build without single-buffered pipeline_mode: weights get
        # double-buffered, so re-derive the row budget against 2x the weight
        # footprint (matters on v7x's 64 MiB) instead of masking the error.
        bt = _choose_bt(B, Sp, _target_rows(Hp, 2 * resident_w_bytes, vmem_limit))
        return _launch(bt, None)


# --------------------------------------------------------------------------- #
# Pure-JAX reference (mirrors the PyTorch forward exactly, all f32, erf GELU)
# --------------------------------------------------------------------------- #
def reference_forward(input_ids, params):
    B, S = input_ids.shape
    tok = jnp.take(params["embedding"], input_ids, axis=0)
    pos = params["pos_embedding"][:S][None, :, :]
    x = tok + pos                                                    # [B,S,H]

    def conv1d_gelu(h, w, b):            # w: (3, H_in, H_out)
        hp = jnp.pad(h, ((0, 0), (1, 1), (0, 0)))
        y = sum(jnp.einsum("bsi,io->bso", hp[:, k:k + S], w[k]) for k in range(3))
        y = y + b[0]
        return jax.nn.gelu(y, approximate=False)

    h = conv1d_gelu(x, params["conv1_w"], params["conv1_b"])
    h = conv1d_gelu(h, params["conv2_w"], params["conv2_b"])
    h = conv1d_gelu(h, params["conv3_w"], params["conv3_b"])

    h = jnp.einsum("bsi,io->bso", h, params["proj_w"]) + params["proj_b"][0]
    h = jax.nn.gelu(h, approximate=False)
    mean = jnp.mean(h, axis=-1, keepdims=True)
    var = jnp.mean((h - mean) ** 2, axis=-1, keepdims=True)
    h = (h - mean) * jax.lax.rsqrt(var + 1e-5)
    return h * params["ln_gamma"][0] + params["ln_beta"][0]


def make_params(key, vocab_size, hidden_size, max_length):
    ks = jax.random.split(key, 10)
    H = hidden_size
    std = 0.02
    return {
        "embedding": jax.random.normal(ks[0], (vocab_size, H), jnp.float32) * std,
        "pos_embedding": jax.random.normal(ks[1], (max_length, H), jnp.float32) * std,
        # conv weights stored as (tap=3, H_in, H_out): w[k] = torch_weight[:, :, k].T
        "conv1_w": jax.random.normal(ks[2], (3, H, H), jnp.float32) * std,
        "conv1_b": jax.random.normal(ks[3], (1, H), jnp.float32) * std,
        "conv2_w": jax.random.normal(ks[4], (3, H, H), jnp.float32) * std,
        "conv2_b": jax.random.normal(ks[5], (1, H), jnp.float32) * std,
        "conv3_w": jax.random.normal(ks[6], (3, H, H), jnp.float32) * std,
        "conv3_b": jax.random.normal(ks[7], (1, H), jnp.float32) * std,
        # linear stored as (H_in, H_out): torch_weight.T
        "proj_w": jax.random.normal(ks[8], (H, H), jnp.float32) * std,
        "proj_b": jax.random.normal(ks[9], (1, H), jnp.float32) * std,
        "ln_gamma": jnp.ones((1, H), jnp.float32),
        "ln_beta": jnp.zeros((1, H), jnp.float32),
    }


if __name__ == "__main__":
    # Small, forward-consistent shapes.
    vocab_size, hidden_size, max_length = 100, 32, 16
    batch, seq = 2, 8

    key = jax.random.PRNGKey(0)
    k_par, k_ids = jax.random.split(key)
    params = make_params(k_par, vocab_size, hidden_size, max_length)
    input_ids = jax.random.randint(k_ids, (batch, seq), 0, vocab_size,
                                   dtype=jnp.int32)

    packed = pack_encoder_params(params)          # pack ONCE, reuse per call
    encode = jax.jit(ane_text_encoder)

    out = jax.block_until_ready(encode(input_ids, packed))
    ref = jax.block_until_ready(reference_forward(input_ids, params))

    assert out.shape == (batch, seq, hidden_size)
    # bf16 weights/activations (f32 MXU accumulation) + tanh GELU vs a pure
    # f32 / erf-GELU reference, so the tolerance is loosened accordingly.
    np.testing.assert_allclose(np.asarray(out), np.asarray(ref),
                               rtol=5e-2, atol=5e-2)
    print("KERNEL_OK")
</pallas_src>

<mosaic_0001>
module attributes {stable_mosaic.version = 11 : i64} {
  func.func @_encoder_kernel(%arg0: i32, %arg1: memref<8x128xbf16, #tpu.memory_space<vmem>>, %arg2: memref<384x128xbf16, #tpu.memory_space<vmem>>, %arg3: memref<384x128xbf16, #tpu.memory_space<vmem>>, %arg4: memref<384x128xbf16, #tpu.memory_space<vmem>>, %arg5: memref<128x128xbf16, #tpu.memory_space<vmem>>, %arg6: memref<6x128xf32, #tpu.memory_space<vmem>>, %arg7: memref<8x128xf32, #tpu.memory_space<vmem>>) attributes {dimension_semantics = [#tpu.dimension_semantics<parallel>], iteration_bounds = array<i64: 2>, scalar_prefetch = 0 : i64, scratch_operands = 0 : i64, tpu.core_type = #tpu.core_type<tc>, window_params = [{transform_indices = @transform_0, window_bounds = array<i64: 8, 128>}, {pipeline_mode = #tpu.pipeline_mode<synchronous>, transform_indices = @transform_1, window_bounds = array<i64: 384, 128>}, {pipeline_mode = #tpu.pipeline_mode<synchronous>, transform_indices = @transform_2, window_bounds = array<i64: 384, 128>}, {pipeline_mode = #tpu.pipeline_mode<synchronous>, transform_indices = @transform_3, window_bounds = array<i64: 384, 128>}, {pipeline_mode = #tpu.pipeline_mode<synchronous>, transform_indices = @transform_4, window_bounds = array<i64: 128, 128>}, {pipeline_mode = #tpu.pipeline_mode<synchronous>, transform_indices = @transform_5, window_bounds = array<i64: 6, 128>}, {transform_indices = @transform_6, window_bounds = array<i64: 8, 128>}]} {
    %c0 = arith.constant 0 : index
    %c0_0 = arith.constant 0 : index
    %0 = vector.load %arg6[%c0, %c0_0] : memref<6x128xf32, #tpu.memory_space<vmem>>, vector<6x128xf32>
    %1 = vector.extract_strided_slice %0 {offsets = [0, 0], sizes = [1, 128], strides = [1, 1]} : vector<6x128xf32> to vector<1x128xf32>
    %2 = vector.extract_strided_slice %0 {offsets = [1, 0], sizes = [1, 128], strides = [1, 1]} : vector<6x128xf32> to vector<1x128xf32>
    %3 = vector.extract_strided_slice %0 {offsets = [2, 0], sizes = [1, 128], strides = [1, 1]} : vector<6x128xf32> to vector<1x128xf32>
    %4 = vector.extract_strided_slice %0 {offsets = [3, 0], sizes = [1, 128], strides = [1, 1]} : vector<6x128xf32> to vector<1x128xf32>
    %5 = vector.extract_strided_slice %0 {offsets = [4, 0], sizes = [1, 128], strides = [1, 1]} : vector<6x128xf32> to vector<1x128xf32>
    %6 = vector.extract_strided_slice %0 {offsets = [5, 0], sizes = [1, 128], strides = [1, 1]} : vector<6x128xf32> to vector<1x128xf32>
    %7 = tpu.iota {dimensions = array<i32: 0>} : vector<8x1xi32>
    %c8_i32 = arith.constant 8 : i32
    %c0_i32 = arith.constant 0 : i32
    %8 = arith.cmpi eq, %c8_i32, %c0_i32 : i32
    %c1_i32 = arith.constant 1 : i32
    %9 = arith.select %8, %c1_i32, %c8_i32 : i32
    %10 = vector.broadcast %9 : i32 to vector<8x1xi32>
    %11 = arith.remsi %7, %10 : vector<8x1xi32>
    %c0_i32_1 = arith.constant 0 : i32
    %12 = vector.broadcast %c0_i32_1 : i32 to vector<8x1xi32>
    %13 = arith.cmpi ne, %11, %12 : vector<8x1xi32>
    %c0_i32_2 = arith.constant 0 : i32
    %14 = vector.broadcast %c0_i32_2 : i32 to vector<8x1xi32>
    %15 = arith.cmpi slt, %11, %14 : vector<8x1xi32>
    %c0_i32_3 = arith.constant 0 : i32
    %16 = arith.cmpi slt, %9, %c0_i32_3 : i32
    %17 = vector.broadcast %16 : i1 to vector<8x1xi1>
    %18 = vector.broadcast %17 : vector<8x1xi1> to vector<8x1xi1>
    %19 = arith.xori %15, %18 : vector<8x1xi1>
    %20 = arith.andi %19, %13 : vector<8x1xi1>
    %21 = vector.broadcast %9 : i32 to vector<8x1xi32>
    %22 = arith.addi %11, %21 : vector<8x1xi32>
    %23 = arith.select %20, %22, %11 : vector<8x1xi1>, vector<8x1xi32>
    %c0_i32_4 = arith.constant 0 : i32
    %24 = vector.broadcast %c0_i32_4 : i32 to vector<8x1xi32>
    %25 = arith.cmpi eq, %23, %24 : vector<8x1xi32>
    %c7_i32 = arith.constant 7 : i32
    %26 = vector.broadcast %c7_i32 : i32 to vector<8x1xi32>
    %27 = arith.cmpi eq, %23, %26 : vector<8x1xi32>
    %c0_5 = arith.constant 0 : index
    %c0_6 = arith.constant 0 : index
    %28 = vector.load %arg1[%c0_5, %c0_6] : memref<8x128xbf16, #tpu.memory_space<vmem>>, vector<8x128xbf16>
    %29 = arith.extf %28 : vector<8x128xbf16> to vector<8x128xf32>
    %c1_i32_7 = arith.constant 1 : i32
    %30 = tpu.dynamic_rotate %29 by %c1_i32_7 dim 0 : vector<8x128xf32>, i32 -> vector<8x128xf32>
    %cst = arith.constant 0.000000e+00 : f32
    %31 = vector.shape_cast %25 : vector<8x1xi1> to vector<8x1xi1>
    %32 = vector.broadcast %31 : vector<8x1xi1> to vector<8x128xi1>
    %33 = vector.broadcast %cst : f32 to vector<8x128xf32>
    %34 = arith.select %32, %33, %30 : vector<8x128xi1>, vector<8x128xf32>
    %c7_i32_8 = arith.constant 7 : i32
    %35 = tpu.dynamic_rotate %29 by %c7_i32_8 dim 0 : vector<8x128xf32>, i32 -> vector<8x128xf32>
    %cst_9 = arith.constant 0.000000e+00 : f32
    %36 = vector.shape_cast %27 : vector<8x1xi1> to vector<8x1xi1>
    %37 = vector.broadcast %36 : vector<8x1xi1> to vector<8x128xi1>
    %38 = vector.broadcast %cst_9 : f32 to vector<8x128xf32>
    %39 = arith.select %37, %38, %35 : vector<8x128xi1>, vector<8x128xf32>
    %40 = arith.truncf %29 : vector<8x128xf32> to vector<8x128xbf16>
    %c128 = arith.constant 128 : index
    %c0_10 = arith.constant 0 : index
    %41 = vector.load %arg2[%c128, %c0_10] : memref<384x128xbf16, #tpu.memory_space<vmem>>, vector<128x128xbf16>
    %cst_11 = arith.constant dense<0.000000e+00> : vector<8x128xf32>
    %42 = tpu.matmul %40, %41, %cst_11 {dimension_numbers = #tpu.dot_dimension_numbers<[1], [0], [0], [1], [0, 0, 1, 1], [], []>} : vector<8x128xbf16>, vector<128x128xbf16>, vector<8x128xf32> -> vector<8x128xf32>
    %43 = arith.truncf %34 : vector<8x128xf32> to vector<8x128xbf16>
    %c0_12 = arith.constant 0 : index
    %c0_13 = arith.constant 0 : index
    %44 = vector.load %arg2[%c0_12, %c0_13] : memref<384x128xbf16, #tpu.memory_space<vmem>>, vector<128x128xbf16>
    %cst_14 = arith.constant dense<0.000000e+00> : vector<8x128xf32>
    %45 = tpu.matmul %43, %44, %cst_14 {dimension_numbers = #tpu.dot_dimension_numbers<[1], [0], [0], [1], [0, 0, 1, 1], [], []>} : vector<8x128xbf16>, vector<128x128xbf16>, vector<8x128xf32> -> vector<8x128xf32>
    %46 = arith.addf %42, %45 : vector<8x128xf32>
    %47 = arith.truncf %39 : vector<8x128xf32> to vector<8x128xbf16>
    %c256 = arith.constant 256 : index
    %c0_15 = arith.constant 0 : index
    %48 = vector.load %arg2[%c256, %c0_15] : memref<384x128xbf16, #tpu.memory_space<vmem>>, vector<128x128xbf16>
    %cst_16 = arith.constant dense<0.000000e+00> : vector<8x128xf32>
    %49 = tpu.matmul %47, %48, %cst_16 {dimension_numbers = #tpu.dot_dimension_numbers<[1], [0], [0], [1], [0, 0, 1, 1], [], []>} : vector<8x128xbf16>, vector<128x128xbf16>, vector<8x128xf32> -> vector<8x128xf32>
    %50 = arith.addf %46, %49 : vector<8x128xf32>
    %51 = vector.broadcast %1 : vector<1x128xf32> to vector<8x128xf32>
    %52 = arith.addf %50, %51 : vector<8x128xf32>
    %53 = arith.mulf %52, %52 : vector<8x128xf32>
    %54 = arith.mulf %52, %53 : vector<8x128xf32>
    %cst_17 = arith.constant 4.471500e-02 : f32
    %55 = vector.broadcast %cst_17 : f32 to vector<8x128xf32>
    %56 = arith.mulf %55, %54 : vector<8x128xf32>
    %57 = arith.addf %52, %56 : vector<8x128xf32>
    %cst_18 = arith.constant 0.797884583 : f32
    %58 = vector.broadcast %cst_18 : f32 to vector<8x128xf32>
    %59 = arith.mulf %58, %57 : vector<8x128xf32>
    %60 = math.tanh %59 : vector<8x128xf32>
    %cst_19 = arith.constant 1.000000e+00 : f32
    %61 = vector.broadcast %cst_19 : f32 to vector<8x128xf32>
    %62 = arith.addf %61, %60 : vector<8x128xf32>
    %cst_20 = arith.constant 5.000000e-01 : f32
    %63 = vector.broadcast %cst_20 : f32 to vector<8x128xf32>
    %64 = arith.mulf %63, %62 : vector<8x128xf32>
    %65 = arith.mulf %52, %64 : vector<8x128xf32>
    %c1_i32_21 = arith.constant 1 : i32
    %66 = tpu.dynamic_rotate %65 by %c1_i32_21 dim 0 : vector<8x128xf32>, i32 -> vector<8x128xf32>
    %cst_22 = arith.constant 0.000000e+00 : f32
    %67 = vector.shape_cast %25 : vector<8x1xi1> to vector<8x1xi1>
    %68 = vector.broadcast %67 : vector<8x1xi1> to vector<8x128xi1>
    %69 = vector.broadcast %cst_22 : f32 to vector<8x128xf32>
    %70 = arith.select %68, %69, %66 : vector<8x128xi1>, vector<8x128xf32>
    %c7_i32_23 = arith.constant 7 : i32
    %71 = tpu.dynamic_rotate %65 by %c7_i32_23 dim 0 : vector<8x128xf32>, i32 -> vector<8x128xf32>
    %cst_24 = arith.constant 0.000000e+00 : f32
    %72 = vector.shape_cast %27 : vector<8x1xi1> to vector<8x1xi1>
    %73 = vector.broadcast %72 : vector<8x1xi1> to vector<8x128xi1>
    %74 = vector.broadcast %cst_24 : f32 to vector<8x128xf32>
    %75 = arith.select %73, %74, %71 : vector<8x128xi1>, vector<8x128xf32>
    %76 = arith.truncf %65 : vector<8x128xf32> to vector<8x128xbf16>
    %c128_25 = arith.constant 128 : index
    %c0_26 = arith.constant 0 : index
    %77 = vector.load %arg3[%c128_25, %c0_26] : memref<384x128xbf16, #tpu.memory_space<vmem>>, vector<128x128xbf16>
    %cst_27 = arith.constant dense<0.000000e+00> : vector<8x128xf32>
    %78 = tpu.matmul %76, %77, %cst_27 {dimension_numbers = #tpu.dot_dimension_numbers<[1], [0], [0], [1], [0, 0, 1, 1], [], []>} : vector<8x128xbf16>, vector<128x128xbf16>, vector<8x128xf32> -> vector<8x128xf32>
    %79 = arith.truncf %70 : vector<8x128xf32> to vector<8x128xbf16>
    %c0_28 = arith.constant 0 : index
    %c0_29 = arith.constant 0 : index
    %80 = vector.load %arg3[%c0_28, %c0_29] : memref<384x128xbf16, #tpu.memory_space<vmem>>, vector<128x128xbf16>
    %cst_30 = arith.constant dense<0.000000e+00> : vector<8x128xf32>
    %81 = tpu.matmul %79, %80, %cst_30 {dimension_numbers = #tpu.dot_dimension_numbers<[1], [0], [0], [1], [0, 0, 1, 1], [], []>} : vector<8x128xbf16>, vector<128x128xbf16>, vector<8x128xf32> -> vector<8x128xf32>
    %82 = arith.addf %78, %81 : vector<8x128xf32>
    %83 = arith.truncf %75 : vector<8x128xf32> to vector<8x128xbf16>
    %c256_31 = arith.constant 256 : index
    %c0_32 = arith.constant 0 : index
    %84 = vector.load %arg3[%c256_31, %c0_32] : memref<384x128xbf16, #tpu.memory_space<vmem>>, vector<128x128xbf16>
    %cst_33 = arith.constant dense<0.000000e+00> : vector<8x128xf32>
    %85 = tpu.matmul %83, %84, %cst_33 {dimension_numbers = #tpu.dot_dimension_numbers<[1], [0], [0], [1], [0, 0, 1, 1], [], []>} : vector<8x128xbf16>, vector<128x128xbf16>, vector<8x128xf32> -> vector<8x128xf32>
    %86 = arith.addf %82, %85 : vector<8x128xf32>
    %87 = vector.broadcast %2 : vector<1x128xf32> to vector<8x128xf32>
    %88 = arith.addf %86, %87 : vector<8x128xf32>
    %89 = arith.mulf %88, %88 : vector<8x128xf32>
    %90 = arith.mulf %88, %89 : vector<8x128xf32>
    %cst_34 = arith.constant 4.471500e-02 : f32
    %91 = vector.broadcast %cst_34 : f32 to vector<8x128xf32>
    %92 = arith.mulf %91, %90 : vector<8x128xf32>
    %93 = arith.addf %88, %92 : vector<8x128xf32>
    %cst_35 = arith.constant 0.797884583 : f32
    %94 = vector.broadcast %cst_35 : f32 to vector<8x128xf32>
    %95 = arith.mulf %94, %93 : vector<8x128xf32>
    %96 = math.tanh %95 : vector<8x128xf32>
    %cst_36 = arith.constant 1.000000e+00 : f32
    %97 = vector.broadcast %cst_36 : f32 to vector<8x128xf32>
    %98 = arith.addf %97, %96 : vector<8x128xf32>
    %cst_37 = arith.constant 5.000000e-01 : f32
    %99 = vector.broadcast %cst_37 : f32 to vector<8x128xf32>
    %100 = arith.mulf %99, %98 : vector<8x128xf32>
    %101 = arith.mulf %88, %100 : vector<8x128xf32>
    %c1_i32_38 = arith.constant 1 : i32
    %102 = tpu.dynamic_rotate %101 by %c1_i32_38 dim 0 : vector<8x128xf32>, i32 -> vector<8x128xf32>
    %cst_39 = arith.constant 0.000000e+00 : f32
    %103 = vector.shape_cast %25 : vector<8x1xi1> to vector<8x1xi1>
    %104 = vector.broadcast %103 : vector<8x1xi1> to vector<8x128xi1>
    %105 = vector.broadcast %cst_39 : f32 to vector<8x128xf32>
    %106 = arith.select %104, %105, %102 : vector<8x128xi1>, vector<8x128xf32>
    %c7_i32_40 = arith.constant 7 : i32
    %107 = tpu.dynamic_rotate %101 by %c7_i32_40 dim 0 : vector<8x128xf32>, i32 -> vector<8x128xf32>
    %cst_41 = arith.constant 0.000000e+00 : f32
    %108 = vector.shape_cast %27 : vector<8x1xi1> to vector<8x1xi1>
    %109 = vector.broadcast %108 : vector<8x1xi1> to vector<8x128xi1>
    %110 = vector.broadcast %cst_41 : f32 to vector<8x128xf32>
    %111 = arith.select %109, %110, %107 : vector<8x128xi1>, vector<8x128xf32>
    %112 = arith.truncf %101 : vector<8x128xf32> to vector<8x128xbf16>
    %c128_42 = arith.constant 128 : index
    %c0_43 = arith.constant 0 : index
    %113 = vector.load %arg4[%c128_42, %c0_43] : memref<384x128xbf16, #tpu.memory_space<vmem>>, vector<128x128xbf16>
    %cst_44 = arith.constant dense<0.000000e+00> : vector<8x128xf32>
    %114 = tpu.matmul %112, %113, %cst_44 {dimension_numbers = #tpu.dot_dimension_numbers<[1], [0], [0], [1], [0, 0, 1, 1], [], []>} : vector<8x128xbf16>, vector<128x128xbf16>, vector<8x128xf32> -> vector<8x128xf32>
    %115 = arith.truncf %106 : vector<8x128xf32> to vector<8x128xbf16>
    %c0_45 = arith.constant 0 : index
    %c0_46 = arith.constant 0 : index
    %116 = vector.load %arg4[%c0_45, %c0_46] : memref<384x128xbf16, #tpu.memory_space<vmem>>, vector<128x128xbf16>
    %cst_47 = arith.constant dense<0.000000e+00> : vector<8x128xf32>
    %117 = tpu.matmul %115, %116, %cst_47 {dimension_numbers = #tpu.dot_dimension_numbers<[1], [0], [0], [1], [0, 0, 1, 1], [], []>} : vector<8x128xbf16>, vector<128x128xbf16>, vector<8x128xf32> -> vector<8x128xf32>
    %118 = arith.addf %114, %117 : vector<8x128xf32>
    %119 = arith.truncf %111 : vector<8x128xf32> to vector<8x128xbf16>
    %c256_48 = arith.constant 256 : index
    %c0_49 = arith.constant 0 : index
    %120 = vector.load %arg4[%c256_48, %c0_49] : memref<384x128xbf16, #tpu.memory_space<vmem>>, vector<128x128xbf16>
    %cst_50 = arith.constant dense<0.000000e+00> : vector<8x128xf32>
    %121 = tpu.matmul %119, %120, %cst_50 {dimension_numbers = #tpu.dot_dimension_numbers<[1], [0], [0], [1], [0, 0, 1, 1], [], []>} : vector<8x128xbf16>, vector<128x128xbf16>, vector<8x128xf32> -> vector<8x128xf32>
    %122 = arith.addf %118, %121 : vector<8x128xf32>
    %123 = vector.broadcast %3 : vector<1x128xf32> to vector<8x128xf32>
    %124 = arith.addf %122, %123 : vector<8x128xf32>
    %125 = arith.mulf %124, %124 : vector<8x128xf32>
    %126 = arith.mulf %124, %125 : vector<8x128xf32>
    %cst_51 = arith.constant 4.471500e-02 : f32
    %127 = vector.broadcast %cst_51 : f32 to vector<8x128xf32>
    %128 = arith.mulf %127, %126 : vector<8x128xf32>
    %129 = arith.addf %124, %128 : vector<8x128xf32>
    %cst_52 = arith.constant 0.797884583 : f32
    %130 = vector.broadcast %cst_52 : f32 to vector<8x128xf32>
    %131 = arith.mulf %130, %129 : vector<8x128xf32>
    %132 = math.tanh %131 : vector<8x128xf32>
    %cst_53 = arith.constant 1.000000e+00 : f32
    %133 = vector.broadcast %cst_53 : f32 to vector<8x128xf32>
    %134 = arith.addf %133, %132 : vector<8x128xf32>
    %cst_54 = arith.constant 5.000000e-01 : f32
    %135 = vector.broadcast %cst_54 : f32 to vector<8x128xf32>
    %136 = arith.mulf %135, %134 : vector<8x128xf32>
    %137 = arith.mulf %124, %136 : vector<8x128xf32>
    %138 = arith.truncf %137 : vector<8x128xf32> to vector<8x128xbf16>
    %c0_55 = arith.constant 0 : index
    %c0_56 = arith.constant 0 : index
    %139 = vector.load %arg5[%c0_55, %c0_56] : memref<128x128xbf16, #tpu.memory_space<vmem>>, vector<128x128xbf16>
    %cst_57 = arith.constant dense<0.000000e+00> : vector<8x128xf32>
    %140 = tpu.matmul %138, %139, %cst_57 {dimension_numbers = #tpu.dot_dimension_numbers<[1], [0], [0], [1], [0, 0, 1, 1], [], []>} : vector<8x128xbf16>, vector<128x128xbf16>, vector<8x128xf32> -> vector<8x128xf32>
    %141 = vector.broadcast %4 : vector<1x128xf32> to vector<8x128xf32>
    %142 = arith.addf %140, %141 : vector<8x128xf32>
    %143 = arith.mulf %142, %142 : vector<8x128xf32>
    %144 = arith.mulf %142, %143 : vector<8x128xf32>
    %cst_58 = arith.constant 4.471500e-02 : f32
    %145 = vector.broadcast %cst_58 : f32 to vector<8x128xf32>
    %146 = arith.mulf %145, %144 : vector<8x128xf32>
    %147 = arith.addf %142, %146 : vector<8x128xf32>
    %cst_59 = arith.constant 0.797884583 : f32
    %148 = vector.broadcast %cst_59 : f32 to vector<8x128xf32>
    %149 = arith.mulf %148, %147 : vector<8x128xf32>
    %150 = math.tanh %149 : vector<8x128xf32>
    %cst_60 = arith.constant 1.000000e+00 : f32
    %151 = vector.broadcast %cst_60 : f32 to vector<8x128xf32>
    %152 = arith.addf %151, %150 : vector<8x128xf32>
    %cst_61 = arith.constant 5.000000e-01 : f32
    %153 = vector.broadcast %cst_61 : f32 to vector<8x128xf32>
    %154 = arith.mulf %153, %152 : vector<8x128xf32>
    %155 = arith.mulf %142, %154 : vector<8x128xf32>
    %cst_62 = arith.constant dense<0.000000e+00> : vector<8xf32>
    %156 = vector.multi_reduction <add>, %155, %cst_62 [1] : vector<8x128xf32> to vector<8xf32>
    %157 = vector.shape_cast %156 : vector<8xf32> to vector<8x1xf32>
    %cst_63 = arith.constant 3.125000e-02 : f32
    %158 = vector.broadcast %cst_63 : f32 to vector<8x1xf32>
    %159 = arith.mulf %157, %158 : vector<8x1xf32>
    %160 = vector.broadcast %159 : vector<8x1xf32> to vector<8x128xf32>
    %161 = arith.subf %155, %160 : vector<8x128xf32>
    %162 = tpu.iota {dimensions = array<i32: 1>} : vector<1x128xi32>
    %c32_i32 = arith.constant 32 : i32
    %163 = vector.broadcast %c32_i32 : i32 to vector<1x128xi32>
    %164 = arith.cmpi slt, %162, %163 : vector<1x128xi32>
    %cst_64 = arith.constant 0.000000e+00 : f32
    %165 = vector.shape_cast %164 : vector<1x128xi1> to vector<1x128xi1>
    %166 = vector.broadcast %165 : vector<1x128xi1> to vector<8x128xi1>
    %167 = vector.broadcast %cst_64 : f32 to vector<8x128xf32>
    %168 = arith.select %166, %161, %167 : vector<8x128xi1>, vector<8x128xf32>
    %169 = arith.mulf %168, %168 : vector<8x128xf32>
    %cst_65 = arith.constant dense<0.000000e+00> : vector<8xf32>
    %170 = vector.multi_reduction <add>, %169, %cst_65 [1] : vector<8x128xf32> to vector<8xf32>
    %171 = vector.shape_cast %170 : vector<8xf32> to vector<8x1xf32>
    %cst_66 = arith.constant 3.125000e-02 : f32
    %172 = vector.broadcast %cst_66 : f32 to vector<8x1xf32>
    %173 = arith.mulf %171, %172 : vector<8x1xf32>
    %cst_67 = arith.constant 9.99999974E-6 : f32
    %174 = vector.broadcast %cst_67 : f32 to vector<8x1xf32>
    %175 = arith.addf %173, %174 : vector<8x1xf32>
    %176 = math.rsqrt %175 : vector<8x1xf32>
    %177 = vector.broadcast %176 : vector<8x1xf32> to vector<8x128xf32>
    %178 = arith.mulf %168, %177 : vector<8x128xf32>
    %179 = vector.broadcast %5 : vector<1x128xf32> to vector<8x128xf32>
    %180 = arith.mulf %178, %179 : vector<8x128xf32>
    %181 = vector.broadcast %6 : vector<1x128xf32> to vector<8x128xf32>
    %182 = arith.addf %180, %181 : vector<8x128xf32>
    %c0_68 = arith.constant 0 : index
    %c0_69 = arith.constant 0 : index
    %183 = vector.load %arg7[%c0_68, %c0_69] : memref<8x128xf32, #tpu.memory_space<vmem>>, vector<8x128xf32>
    tpu.vector_store %arg7[%c0_68, %c0_69], %182 {strides = array<i32>} : memref<8x128xf32, #tpu.memory_space<vmem>>, vector<8x128xf32>,
    return
  }
  func.func @transform_0(%arg0: i32) -> (i32, i32) {
    %c0_i32 = arith.constant 0 : i32
    %c0_i32_0 = arith.constant 0 : i32
    return %arg0, %c0_i32 : i32, i32
  }
  func.func @transform_1(%arg0: i32) -> (i32, i32) {
    %c0_i32 = arith.constant 0 : i32
    %c0_i32_0 = arith.constant 0 : i32
    %c0_i32_1 = arith.constant 0 : i32
    return %c0_i32, %c0_i32_0 : i32, i32
  }
  func.func @transform_2(%arg0: i32) -> (i32, i32) {
    %c0_i32 = arith.constant 0 : i32
    %c0_i32_0 = arith.constant 0 : i32
    %c0_i32_1 = arith.constant 0 : i32
    return %c0_i32, %c0_i32_0 : i32, i32
  }
  func.func @transform_3(%arg0: i32) -> (i32, i32) {
    %c0_i32 = arith.constant 0 : i32
    %c0_i32_0 = arith.constant 0 : i32
    %c0_i32_1 = arith.constant 0 : i32
    return %c0_i32, %c0_i32_0 : i32, i32
  }
  func.func @transform_4(%arg0: i32) -> (i32, i32) {
    %c0_i32 = arith.constant 0 : i32
    %c0_i32_0 = arith.constant 0 : i32
    %c0_i32_1 = arith.constant 0 : i32
    return %c0_i32, %c0_i32_0 : i32, i32
  }
  func.func @transform_5(%arg0: i32) -> (i32, i32) {
    %c0_i32 = arith.constant 0 : i32
    %c0_i32_0 = arith.constant 0 : i32
    %c0_i32_1 = arith.constant 0 : i32
    return %c0_i32, %c0_i32_0 : i32, i32
  }
  func.func @transform_6(%arg0: i32) -> (i32, i32) {
    %c0_i32 = arith.constant 0 : i32
    %c0_i32_0 = arith.constant 0 : i32
    return %arg0, %c0_i32 : i32, i32
  }
}

</mosaic_0001>

<bundles_post_ra>
// kernel: ane_text_encoder.1
= control target key start
LH: loop header
LB: loop body
LE: loop exit
PB: predicated region body
PF: predicated region fallthrough
CT: control target
= control target key end

     0   :  { %11 = vsyncpa [#allocation3], 0  ;;  %s2197_s0 = inlined_call_operand.vmem [shape: bf16[16,128], index: 0, kind: input, shape index: {}]   ;;  %s2198_s1 = inlined_call_operand.vmem [shape: bf16[384,128], index: 1, kind: input, shape index: {}]   ;;  %s2199_s2 = inlined_call_operand.hbm [shape: bf16[384,128], index: 2, kind: input, shape index: {}]   ;;  %s2200_s3 = inlined_call_operand.hbm [shape: bf16[384,128], index: 3, kind: input, shape index: {}]   ;;  %s2201_s4 = inlined_call_operand.vmem [shape: bf16[128,128], index: 4, kind: input, shape index: {}]   ;;  %s2202_s5 = inlined_call_operand.vmem [shape: f32[6,128], index: 5, kind: input, shape index: {}]   ;;  %s2203_s6 = inlined_call_operand.hbm [shape: f32[16,128], index: 6, kind: output, shape index: {}]  }
   0x1   :  { %12 = vsyncpa [#allocation6], 0 }
   0x2   :  { %13 = vsyncpa [#allocation4], 0 }
   0x3   :  { %15 = vsyncpa [#allocation4 + $0x1], 0  ;;  %s1958_s21 = smov 0   ;;  %s1960_s22 = smov 0  }
   0x4   :  { %s1962_s23 = smov 0   ;;  %s1964_s24 = smov 0  }
   0x5 LB: > { %s1979_s25 = sadd.s32 4294967295, %s1917_s24   ;;  %s1269_s26 = sadd.s32 4294967294, %s1917_s24   ;;  %s1917_s24 = sphi %s1964_s24, %s2214_s24   ;;  %s1913_s23 = sphi %s1962_s23, %s2213_s23   ;;  %s1909_s22 = sphi %s1960_s22, %s2212_s22   ;;  %s1905_s21 = sphi %s1958_s21, %s2211_s21  }
   0x6   : > { %s1983_s27 = sadd.s32 1, %s1917_s24   ;;  %s159_s28 = sadd.s32 1, %s1913_s23 }
   0x7   : > { %s156_s29 = ssub.s32 %s1917_s24, %s1983_s27  ;;  %p169_p0 = scmp.ne.s32.totalorder %s1913_s23, %s1909_s22 }
   0x8   : > { %p157_p1 = scmp.eq.s32.totalorder %s156_s29, 0  ;;  %p170_p2 = scmp.eq.s32.totalorder %s1979_s25, 1 }
   0x9   : > { %p175_p3 = scmp.ne.s32.totalorder %s1909_s22, %s1905_s21  ;;  %p176_p4 = scmp.eq.s32.totalorder %s1269_s26, 1 }
   0xa   : > { %s1994_s30 = scalar_select %p157_p1, %s1913_s23, %s159_s28  }
   0xb   : > { %p1996_p5 = por %p170_p2, %p169_p0  ;;  %p2000_p6 = por %p176_p4, %p175_p3 }
   0xc   : > { %p1270_p7 = scmp.ge.s32.totalorder %s1917_s24, 1  ;;  %p183_p8 = scmp.lt.s32.totalorder %s1917_s24, 3 }
   0xd   : > { %p1736_p9 = scmp.eq.s32.totalorder %s1979_s25, 0  ;;  %s197_s12 = sshll.u32 %s2199_s2, 4  ;;  %s198_s12 = int_to_ptr.hbm [resolvable:$true] %s197_s12 }
   0xe   : > { %p2007_p10 = pnand %p1270_p7, %p183_p8  ;;  %s1919_s13 = smov [#allocation2]  }
   0xf   : > { %s199_s14 = sshll.u32 %s1919_s13, 4  ;;  %s211_s17 = sshll.u32 %s2200_s3, 4  ;;  %s200_s14 = int_to_ptr.vmem [resolvable:$true] %s199_s14  ;;  %s212_s17 = int_to_ptr.hbm [resolvable:$true] %s211_s17 }
  0x10   : > { %p1725_p11 = pneg %p2007_p10  ;;  %s1920_s18 = smov 64  }
  0x11   : > { %s1921_s19 = smov 4   ;;  %s1922_s20 = smov [#allocation5]  }
  0x12   : > { %p1726_p12 = pnand %p1736_p9, %p1725_p11  ;;  %s213_s26 = sshll.u32 %s1922_s20, 4  ;;  %s214_s26 = int_to_ptr.vmem [resolvable:$true] %s213_s26 }
  0x13   : > { %242 = sbr.rel (%p2007_p10) target bundleno = 973 (0x3cd), region = 44 }
  0x14   : > { %1728 = dma.hbm_to_vmem [thread:$0]  (!%p1726_p12), %s198_s12, 3072, %s200_s14, [#allocation3], %s1920_s18, %s1920_s18, %s1921_s19  }
  0x15   : > { %1731 = dma.hbm_to_vmem [thread:$0]  (!%p1726_p12), %s212_s17, 3072, %s214_s26, [#allocation6], %s1920_s18, %s1920_s18, %s1921_s19  }
  0x18   : > { %1892 = dma.done.wait (%p1736_p9), [#allocation3], 3072  }
  0x19   : > { %1894 = vsyncadd (%p1736_p9), [#allocation3], 4294964224 }
  0x1a   : > { %1896 = dma.done.wait (%p1736_p9), [#allocation6], 3072  }
  0x1b   : > { %1898 = vsyncadd (%p1736_p9), [#allocation6], 4294964224  ;;  %v1648_v0 = vld [vmem:[%s2198_s1 + $0x38] sm:$0xff]  ;;  %v1647_v3 = vld [vmem:[%s2198_s1 + $0x30] sm:$0xff]  ;;  %p277_p13 = scmp.lt.s32.totalorder %s1979_s25, 1  ;;  %v282_v15 = vlaneseq  ;;  %s1630_s20 = sshll.u32 %s1979_s25, 3 }
  0x1c   : > { %v1640_v1 = vld [vmem:[%s2198_s1 + $0x78] sm:$0xff]  ;;  %389 = vmatpush.bf16.msra.mxu0 %v1648_v0  ;;  %v1639_v4 = vld [vmem:[%s2198_s1 + $0x70] sm:$0xff]  ;;  %v1646_v6 = vld [vmem:[%s2198_s1 + $0x28] sm:$0xff]  ;;  %s1183_s29 = scalar_lea.hbm %s2203_s6, %s1630_s20  ;;  %s1867_s16 = scalar_lea.hbm %s2203_s6, 16 }
  0x1d   : > { %v1656_v2 = vld [vmem:[%s2198_s1 + $0xb8] sm:$0xff]  ;;  %450 = vmatpush.bf16.msra.mxu1 %v1640_v1  ;;  %v1655_v5 = vld [vmem:[%s2198_s1 + $0xb0] sm:$0xff]  ;;  %v1638_v7 = vld [vmem:[%s2198_s1 + $0x68] sm:$0xff]  ;;  %s278_s9 = scalar_select %p277_p13, %s1979_s25, 1  ;;  %v283_v20 = vshrl.u32 %v282_v15, 7 }
  0x1e   : > { %528 = vmatpush.bf16.msra.mxu2 %v1656_v2  ;;  %v1654_v8 = vld [vmem:[%s2198_s1 + $0xa8] sm:$0xff]  ;;  %v1645_v9 = vld [vmem:[%s2198_s1 + $0x20] sm:$0xff]  ;;  %v1644_v12 = vld [vmem:[%s2198_s1 + $0x18] sm:$0xff] }
  0x1f   : > { %v1637_v10 = vld [vmem:[%s2198_s1 + $0x60] sm:$0xff]  ;;  %s1278_s17 = sshll.u32 %s278_s9, 2  ;;  %v1636_v13 = vld [vmem:[%s2198_s1 + $0x58] sm:$0xff]  ;;  %v1643_v16 = vld [vmem:[%s2198_s1 + $0x10] sm:$0xff]  ;;  %v288_v25 = vand.u32 7, %v283_v20 }
  0x20   : > { %390 = vmatpush.bf16.msra.mxu0 %v1647_v3  ;;  %v1653_v11 = vld [vmem:[%s2198_s1 + $0xa0] sm:$0xff]  ;;  %v1652_v14 = vld [vmem:[%s2198_s1 + $0x98] sm:$0xff]  ;;  %s280_s12 = scalar_lea.vmem %s2197_s0, %s1278_s17  ;;  %v1635_v17 = vld [vmem:[%s2198_s1 + $0x50] sm:$0xff]  ;;  %s274_s17 = sand.u32 1, %s1909_s22  }
  0x21   : > { %451 = vmatpush.bf16.msra.mxu1 %v1639_v4  ;;  %v298_v18 = vld [vmem:[%s280_s12] sm:$0xf]  ;;  %v1651_v19 = vld [vmem:[%s2198_s1 + $0x90] sm:$0xff]  ;;  %v1642_v22 = vld [vmem:[%s2198_s1 + $0x8] sm:$0xff]  ;;  %vm1713_vm0 = vcmp.ne.s32.totalorder %v288_v25, 0  ;;  %vm1714_vm1 = vcmp.ne.s32.totalorder %v288_v25, 7 }
  0x22   : > { %529 = vmatpush.bf16.msra.mxu2 %v1655_v5  ;;  %v299_v21 = vunpack.c.l.bf16 %v298_v18  ;;  %v1634_v23 = vld [vmem:[%s2198_s1 + $0x48] sm:$0xff]  ;;  %v1641_v27 = vld [vmem:[%s2198_s1] sm:$0xff]  ;;  %vm2109_vm2 = vmpackc.low %vm1713_vm0, %vm1713_vm0  ;;  %s1277_s19 = sshll.u32 %s274_s17, 3  ;;  %s1187_s12 = sshll.u32 %s1183_s29, 4  ;;  %s1188_s12 = int_to_ptr.hbm [resolvable:$true] %s1187_s12 }
  0x23   : > { %v1650_v24 = vld [vmem:[%s2198_s1 + $0x88] sm:$0xff]  ;;  %v1633_v28 = vld [vmem:[%s2198_s1 + $0x40] sm:$0xff]  ;;  %vm2113_vm3 = vmpackc.low %vm1714_vm1, %vm1714_vm1  ;;  %s276_s10 = scalar_lea.vmem [#allocation7], %s1277_s19  ;;  %s1173_s25 = scalar_lea.sflag [#allocation4], %s274_s17 }
  0x24   : > { %391 = vmatpush.bf16.msra.mxu0 %v1646_v6  ;;  %v300_v26 = vrot.slane %v299_v21, 7  ;;  %v304_v29 = vrot.slane %v299_v21, 1  ;;  %v1649_v30 = vld [vmem:[%s2198_s1 + $0x80] sm:$0xff]  ;;  %v1664_v35 = vld [vmem:[#allocation2 + $0x78] sm:$0xff]  ;;  %v1663_v38 = vld [vmem:[#allocation2 + $0x70] sm:$0xff]  ;;  %s1185_s11 = sshll.u32 %s276_s10, 4  ;;  %s1186_s11 = int_to_ptr.vmem [resolvable:$true] %s1185_s11 }
  0x25   : > { %452 = vmatpush.bf16.msra.mxu1 %v1638_v7  ;;  %v1672_v36 = vld [vmem:[#allocation2 + $0x38] sm:$0xff]  ;;  %v1671_v39 = vld [vmem:[#allocation2 + $0x30] sm:$0xff]  ;;  %v1662_v41 = vld [vmem:[#allocation2 + $0x68] sm:$0xff]  ;;  %s1861_s9 = sshra.s32 %s1188_s12, 4  ;;  %s1862_s9 = int_to_ptr.hbm [resolvable:$true] %s1861_s9 }
  0x26   : > { %530 = vmatpush.bf16.msra.mxu2 %v1654_v8  ;;  %v1314_v31 = vpack.c.bf16 %v300_v26, %v300_v26  ;;  %v1383_v33 = vpack.c.bf16 %v304_v29, %v304_v29  ;;  %v1680_v37 = vld [vmem:[#allocation2 + $0xb8] sm:$0xff]  ;;  %639 = vmatpush.bf16.msra.mxu3 %v1672_v36  ;;  %v1679_v40 = vld [vmem:[#allocation2 + $0xb0] sm:$0xff]  ;;  %v1670_v42 = vld [vmem:[#allocation2 + $0x28] sm:$0xff]  ;;  %s1863_s13 = scalar_lea.hbm %s1862_s9, 8  ;;  %p1868_p3 = scmp.lt.s32.totalorder %s1862_s9, %s2203_s6 }
  0x27   : > { %v1678_v43 = vld [vmem:[#allocation2 + $0xa8] sm:$0xff]  ;;  %v1661_v44 = vld [vmem:[#allocation2 + $0x60] sm:$0xff]  ;;  %v1660_v47 = vld [vmem:[#allocation2 + $0x58] sm:$0xff]  ;;  %p1864_p0 = scmp.ne.s32.totalorder %s1862_s9, %s1863_s13  ;;  %p1869_p4 = scmp.lt.s32.totalorder %s1867_s16, %s1863_s13 }
  0x28   : > { %392 = vmatpush.bf16.msra.mxu0 %v1645_v9  ;;  %v1669_v45 = vld [vmem:[#allocation2 + $0x20] sm:$0xff]  ;;  %v1668_v48 = vld [vmem:[#allocation2 + $0x18] sm:$0xff]  ;;  %v1659_v50 = vld [vmem:[#allocation2 + $0x50] sm:$0xff] }
  0x29   : > { %453 = vmatpush.bf16.msra.mxu1 %v1637_v10  ;;  %v1677_v46 = vld [vmem:[#allocation2 + $0xa0] sm:$0xff]  ;;  %v1676_v49 = vld [vmem:[#allocation2 + $0x98] sm:$0xff]  ;;  %v1667_v51 = vld [vmem:[#allocation2 + $0x10] sm:$0xff]  ;;  %p1865_p1 = pnand %p1864_p0, %p1996_p5  ;;  %p1870_p7 = por %p1869_p4, %p1868_p3 }
  0x2a   : > { %531 = vmatpush.bf16.msra.mxu2 %v1653_v11  ;;  %640 = vmatpush.bf16.msra.mxu3 %v1671_v39  ;;  %v1675_v52 = vld [vmem:[#allocation2 + $0x90] sm:$0xff]  ;;  %v1658_v53 = vld [vmem:[#allocation2 + $0x48] sm:$0xff]  ;;  %v1657_v56 = vld [vmem:[#allocation2 + $0x40] sm:$0xff] }
  0x2b   : > { %v1666_v54 = vld [vmem:[#allocation2 + $0x8] sm:$0xff]  ;;  %v1665_v59 = vld [vmem:[#allocation2] sm:$0xff]  ;;  %v1688_v21 = vld [vmem:[#allocation5 + $0x78] sm:$0xff]  ;;  %p1866_p2 = pneg %p1865_p1 }
  0x2c   : > { %393 = vmatpush.bf16.msra.mxu0 %v1644_v12  ;;  %v1674_v55 = vld [vmem:[#allocation2 + $0x88] sm:$0xff]  ;;  %v1673_v60 = vld [vmem:[#allocation2 + $0x80] sm:$0xff]  ;;  %v1695_v25 = vld [vmem:[#allocation5 + $0x30] sm:$0xff] }
  0x2d   : > { %454 = vmatpush.bf16.msra.mxu1 %v1636_v13  ;;  %v2124_v61 = vld [vmem:[%s2202_s5] sm:$0x3f]  ;;  %v1703_v26 = vld [vmem:[#allocation5 + $0xb0] sm:$0xff]  ;;  %v1702_v29 = vld [vmem:[#allocation5 + $0xa8] sm:$0xff]  ;;  %p1871_p8 = pnand %p1870_p7, %p1866_p2 }
  0x2e   : > { %532 = vmatpush.bf16.msra.mxu2 %v1652_v14  ;;  %641 = vmatpush.bf16.msra.mxu3 %v1670_v42  ;;  %v542_v63 = vperm.slane %v2124_v61, 0  ;;  %v1692_v36 = vld [vmem:[#allocation5 + $0x18] sm:$0xff]  ;;  %v1691_v39 = vld [vmem:[#allocation5 + $0x10] sm:$0xff]  ;;  %v1690_v42 = vld [vmem:[#allocation5 + $0x8] sm:$0xff] }
  0x2f   : > { %v1709_v32 = vld [vmem:[%s2201_s4 + $0x20] sm:$0xff]  ;;  %v1708_v34 = vld [vmem:[%s2201_s4 + $0x18] sm:$0xff] }
  0x30   : > { %394 = vmatpush.bf16.msra.mxu0 %v1643_v16 }
  0x31   : > { %455 = vmatpush.bf16.msra.mxu1 %v1635_v17 }
  0x32   : > { %533 = vmatpush.bf16.msra.mxu2 %v1651_v19  ;;  %642 = vmatpush.bf16.msra.mxu3 %v1669_v45  ;;  %v1681_v45 = vld [vmem:[#allocation5 + $0x40] sm:$0xff] }
  0x34   : > { %395 = vmatpush.bf16.msra.mxu0 %v1642_v22  ;;  %v1696_v22 = vld [vmem:[#allocation5 + $0x38] sm:$0xff] }
  0x35   : > { %456 = vmatpush.bf16.msra.mxu1 %v1634_v23  ;;  %v1704_v23 = vld [vmem:[#allocation5 + $0xb8] sm:$0xff] }
  0x36   : > { %534 = vmatpush.bf16.msra.mxu2 %v1650_v24  ;;  %643 = vmatpush.bf16.msra.mxu3 %v1668_v48  ;;  %v1687_v24 = vld [vmem:[#allocation5 + $0x70] sm:$0xff]  ;;  %v1697_v48 = vld [vmem:[#allocation5 + $0x80] sm:$0xff] }
  0x38   : > { %396 = vmatpush.bf16.msra.mxu0 %v1641_v27  ;;  %v1686_v27 = vld [vmem:[#allocation5 + $0x68] sm:$0xff] }
  0x39   : > { %457 = vmatpush.bf16.msra.mxu1 %v1633_v28  ;;  %v1694_v28 = vld [vmem:[#allocation5 + $0x28] sm:$0xff] }
  0x3a   : > { %535 = vmatpush.bf16.msra.mxu2 %v1649_v30  ;;  %644 = vmatpush.bf16.msra.mxu3 %v1667_v51  ;;  %v1685_v30 = vld [vmem:[#allocation5 + $0x60] sm:$0xff] }
  0x3b   : > { %1315 = vmatmul.msk.bf16.vlgmr.msra.gmra.mxu0 %vm2109_vm2, %v1314_v31  ;;  %v1693_v31 = vld [vmem:[#allocation5 + $0x20] sm:$0xff] }
  0x3c   : > { %458 = vmatmul.bf16.vlgmr.msra.gmra.mxu1 %v298_v18  ;;  %700 = vmatpush.bf16.msrb.mxu0 %v1664_v35  ;;  %v1684_v35 = vld [vmem:[#allocation5 + $0x58] sm:$0xff] }
  0x3d   : > { %1384 = vmatmul.msk.bf16.vlgmr.msra.gmra.mxu2 %vm2113_vm3, %v1383_v33  ;;  %778 = vmatpush.bf16.msrb.mxu1 %v1680_v37  ;;  %v1701_v33 = vld [vmem:[#allocation5 + $0xa0] sm:$0xff]  ;;  %v1700_v37 = vld [vmem:[#allocation5 + $0x98] sm:$0xff] }
  0x3e   : > { %645 = vmatpush.bf16.msra.mxu3 %v1666_v54  ;;  %889 = vmatpush.bf16.msrb.mxu2 %v1696_v22 }
  0x40   : > { %701 = vmatpush.bf16.msrb.mxu0 %v1663_v38  ;;  %v1683_v38 = vld [vmem:[#allocation5 + $0x50] sm:$0xff] }
  0x41   : > { %779 = vmatpush.bf16.msrb.mxu1 %v1679_v40  ;;  %v1699_v40 = vld [vmem:[#allocation5 + $0x90] sm:$0xff] }
  0x42   : > { %646 = vmatpush.bf16.msra.mxu3 %v1665_v59  ;;  %890 = vmatpush.bf16.msrb.mxu2 %v1695_v25 }
  0x44   : > { %702 = vmatpush.bf16.msrb.mxu0 %v1662_v41  ;;  %v1682_v41 = vld [vmem:[#allocation5 + $0x48] sm:$0xff] }
  0x45   : > { %780 = vmatpush.bf16.msrb.mxu1 %v1678_v43  ;;  %v1698_v43 = vld [vmem:[#allocation5 + $0x88] sm:$0xff] }
  0x46   : > { %950 = vmatpush.bf16.msrb.mxu3 %v1688_v21  ;;  %891 = vmatpush.bf16.msrb.mxu2 %v1694_v28 }
  0x48   : > { %703 = vmatpush.bf16.msrb.mxu0 %v1661_v44 }
  0x49   : > { %781 = vmatpush.bf16.msrb.mxu1 %v1677_v46 }
  0x4a   : > { %951 = vmatpush.bf16.msrb.mxu3 %v1687_v24  ;;  %892 = vmatpush.bf16.msrb.mxu2 %v1693_v31 }
  0x4c   : > { %704 = vmatpush.bf16.msrb.mxu0 %v1660_v47  ;;  %v1689_v47 = vld [vmem:[#allocation5] sm:$0xff] }
  0x4d   : > { %782 = vmatpush.bf16.msrb.mxu1 %v1676_v49 }
  0x4e   : > { %952 = vmatpush.bf16.msrb.mxu3 %v1686_v27  ;;  %893 = vmatpush.bf16.msrb.mxu2 %v1692_v36 }
  0x50   : > { %705 = vmatpush.bf16.msrb.mxu0 %v1659_v50 }
  0x51   : > { %783 = vmatpush.bf16.msrb.mxu1 %v1675_v52  ;;  %v792_v52 = vperm.slane %v2124_v61, 1 }
  0x52   : > { %953 = vmatpush.bf16.msrb.mxu3 %v1685_v30  ;;  %894 = vmatpush.bf16.msrb.mxu2 %v1691_v39 }
  0x54   : > { %706 = vmatpush.bf16.msrb.mxu0 %v1658_v53 }
  0x55   : > { %784 = vmatpush.bf16.msrb.mxu1 %v1674_v55 }
  0x56   : > { %954 = vmatpush.bf16.msrb.mxu3 %v1684_v35  ;;  %895 = vmatpush.bf16.msrb.mxu2 %v1690_v42 }
  0x58   : > { %707 = vmatpush.bf16.msrb.mxu0 %v1657_v56 }
  0x59   : > { %785 = vmatpush.bf16.msrb.mxu1 %v1673_v60 }
  0x5a   : > { %955 = vmatpush.bf16.msrb.mxu3 %v1683_v38  ;;  %896 = vmatpush.bf16.msrb.mxu2 %v1689_v47 }
  0x5c   : > { %1028 = vmatpush.bf16.msra.mxu0 %v1704_v23 }
  0x5e   : > { %956 = vmatpush.bf16.msrb.mxu3 %v1682_v41 }
  0x60   : > { %1029 = vmatpush.bf16.msra.mxu0 %v1703_v26 }
  0x62   : > { %957 = vmatpush.bf16.msrb.mxu3 %v1681_v45 }
  0x64   : > { %1030 = vmatpush.bf16.msra.mxu0 %v1702_v29 }
  0x68   : > { %1031 = vmatpush.bf16.msra.mxu0 %v1701_v33 }
  0x6c   : > { %1032 = vmatpush.bf16.msra.mxu0 %v1700_v37  ;;  %v1070_v37 = vperm.slane %v2124_v61, 3 }
  0x70   : > { %1033 = vmatpush.bf16.msra.mxu0 %v1699_v40 }
  0x74   : > { %1034 = vmatpush.bf16.msra.mxu0 %v1698_v43 }
  0x78   : > { %1035 = vmatpush.bf16.msra.mxu0 %v1697_v48 }
  0xb8   : > { %v398_v57 = vpop.f32.mrf.mxu0 }
  0xb9   : > { %v459_v58 = vpop.f32.mrf.mxu1 }
  0xba   : > { %v460_v62 = vadd.f32 %v459_v58, %v398_v57 }
  0xc0   : > { %v537_v0 = vpop.f32.mrf.mxu2  ;;  %v400_v2 = vpop.f32.mrf.mxu0 }
  0xc1   : > { %v541_v1 = vadd.f32 %v537_v0, %v460_v62  ;;  %v461_v3 = vpop.f32.mrf.mxu1 }
  0xc3   : > { %v543_v4 = vadd.f32 %v542_v63, %v541_v1 }
  0xc5   : > { %v544_v5 = vmul.f32 %v543_v4, %v543_v4 }
  0xc7   : > { %v545_v6 = vmul.f32 %v544_v5, %v543_v4 }
  0xc8   : > { %v539_v7 = vpop.f32.mrf.mxu2 }
  0xc9   : > { %v546_v8 = vmul.f32 0.044715, %v545_v6 }
  0xcb   : > { %v547_v9 = vadd.f32 %v546_v8, %v543_v4  ;;  %v1712_v8 = vld [vmem:[%s2201_s4 + $0x38] sm:$0xff] }
  0xcc   : > { %1119 = vmatpush.bf16.msra.mxu1 %v1712_v8 }
  0xcd   : > { %v548_v10 = vmul.f32 0.7978846, %v547_v9  ;;  %v1711_v9 = vld [vmem:[%s2201_s4 + $0x30] sm:$0xff] }
  0xcf   : > { %1777 = vtanh.f32 %v548_v10  ;;  %v1710_v10 = vld [vmem:[%s2201_s4 + $0x28] sm:$0xff] }
  0xd0   : > { %1120 = vmatpush.bf16.msra.mxu1 %v1711_v9 }
  0xd4   : > { %1121 = vmatpush.bf16.msra.mxu1 %v1710_v10 }
  0xd5   : > { %v1778_v11 = vpop.eup %1777 }
  0xd6   : > { %v550_v12 = vadd.f32 1.0, %v1778_v11  ;;  %v1707_v11 = vld [vmem:[%s2201_s4 + $0x10] sm:$0xff] }
  0xd8   : > { %v551_v13 = vmul.f32 0.5, %v550_v12  ;;  %1122 = vmatpush.bf16.msra.mxu1 %v1709_v32  ;;  %v1706_v12 = vld [vmem:[%s2201_s4 + $0x8] sm:$0xff] }
  0xda   : > { %v552_v14 = vmul.f32 %v551_v13, %v543_v4  ;;  %v1705_v13 = vld [vmem:[%s2201_s4] sm:$0xff] }
  0xdc   : > { %v557_v16 = vpack.c.bf16 %v552_v14, %v552_v14  ;;  %v553_v17 = vrot.slane %v552_v14, 7  ;;  %v555_v18 = vrot.slane %v552_v14, 1  ;;  %1123 = vmatpush.bf16.msra.mxu1 %v1708_v34 }
  0xde   : > { %708 = vmatmul.bf16.vlgmr.msrb.gmra.mxu0 %v557_v16  ;;  %v1420_v19 = vpack.c.bf16 %v553_v17, %v553_v17  ;;  %v1489_v20 = vpack.c.bf16 %v555_v18, %v555_v18 }
  0xe0   : > { %1421 = vmatmul.msk.bf16.vlgmr.msra.gmra.mxu3 %vm2109_vm2, %v1420_v19  ;;  %1490 = vmatmul.msk.bf16.vlgmr.msrb.gmra.mxu1 %vm2113_vm3, %v1489_v20  ;;  %v1042_v19 = vperm.slane %v2124_v61, 2 }
  0xe1   : > { %1124 = vmatpush.bf16.msra.mxu1 %v1707_v11 }
  0xe5   : > { %1125 = vmatpush.bf16.msra.mxu1 %v1706_v12 }
  0xe9   : > { %1126 = vmatpush.bf16.msra.mxu1 %v1705_v13 }
 0x15b   : > { %v709_v44 = vpop.f32.mrf.mxu0 }
 0x15d   : > { %v787_v46 = vpop.f32.mrf.mxu1 }
 0x163   : > { %v648_v49 = vpop.f32.mrf.mxu3  ;;  %v711_v50 = vpop.f32.mrf.mxu0 }
 0x164   : > { %v710_v51 = vadd.f32 %v709_v44, %v648_v49  ;;  %v1146_v50 = vand.u32 127, %v282_v15 }
 0x165   : > { %v789_v53 = vpop.f32.mrf.mxu1 }
 0x166   : > { %v791_v54 = vadd.f32 %v787_v46, %v710_v51  ;;  %vm1147_vm4 = vcmp.lt.s32.totalorder %v1146_v50, 32 }
 0x168   : > { %v793_v55 = vadd.f32 %v792_v52, %v791_v54 }
 0x16a   : > { %v794_v56 = vmul.f32 %v793_v55, %v793_v55 }
 0x16b   : > { %v650_v57 = vpop.f32.mrf.mxu3 }
 0x16c   : > { %v795_v58 = vmul.f32 %v794_v56, %v793_v55 }
 0x16e   : > { %v796_v59 = vmul.f32 0.044715, %v795_v58 }
 0x170   : > { %v797_v60 = vadd.f32 %v796_v59, %v793_v55 }
 0x172   : > { %v798_v62 = vmul.f32 0.7978846, %v797_v60 }
 0x174   : > { %1779 = vtanh.f32 %v798_v62 }
 0x17a   : > { %v1780_v63 = vpop.eup %1779 }
 0x17b   : > { %v800_v0 = vadd.f32 1.0, %v1780_v63 }
 0x17d   : > { %v801_v1 = vmul.f32 0.5, %v800_v0 }
 0x17f   : > { %v802_v2 = vmul.f32 %v801_v1, %v793_v55  ;;  %v1167_v1 = vperm.slane %v2124_v61, 4 }
 0x181   : > { %v807_v3 = vpack.c.bf16 %v802_v2, %v802_v2  ;;  %v803_v4 = vrot.slane %v802_v2, 7  ;;  %v805_v5 = vrot.slane %v802_v2, 1 }
 0x183   : > { %958 = vmatmul.bf16.vlgmr.msrb.gmra.mxu3 %v807_v3  ;;  %v1526_v6 = vpack.c.bf16 %v803_v4, %v803_v4  ;;  %v1595_v7 = vpack.c.bf16 %v805_v5, %v805_v5  ;;  %v1169_v4 = vperm.slane %v2124_v61, 5 }
 0x185   : > { %1527 = vmatmul.msk.bf16.vlgmr.msrb.gmra.mxu2 %vm2109_vm2, %v1526_v6  ;;  %1596 = vmatmul.msk.bf16.vlgmr.msra.gmra.mxu0 %vm2113_vm3, %v1595_v7 }
 0x202   : > { %v1037_v14 = vpop.f32.mrf.mxu0 }
 0x206   : > { %v959_v16 = vpop.f32.mrf.mxu3 }
 0x208   : > { %v898_v17 = vpop.f32.mrf.mxu2 }
 0x209   : > { %v960_v18 = vadd.f32 %v959_v16, %v898_v17 }
 0x20a   : > { %v1039_v20 = vpop.f32.mrf.mxu0 }
 0x20b   : > { %v1041_v21 = vadd.f32 %v1037_v14, %v960_v18 }
 0x20d   : > { %v1043_v22 = vadd.f32 %v1042_v19, %v1041_v21 }
 0x20e   : > { %v961_v23 = vpop.f32.mrf.mxu3 }
 0x20f   : > { %v1044_v24 = vmul.f32 %v1043_v22, %v1043_v22 }
 0x210   : > { %v900_v25 = vpop.f32.mrf.mxu2 }
 0x211   : > { %v1045_v26 = vmul.f32 %v1044_v24, %v1043_v22 }
 0x213   : > { %v1046_v27 = vmul.f32 0.044715, %v1045_v26 }
 0x215   : > { %v1047_v28 = vadd.f32 %v1046_v27, %v1043_v22 }
 0x217   : > { %v1048_v29 = vmul.f32 0.7978846, %v1047_v28 }
 0x219   : > { %1781 = vtanh.f32 %v1048_v29 }
 0x21f   : > { %v1782_v30 = vpop.eup %1781 }
 0x220   : > { %v1050_v31 = vadd.f32 1.0, %v1782_v30 }
 0x222   : > { %v1051_v33 = vmul.f32 0.5, %v1050_v31 }
 0x224   : > { %v1052_v35 = vmul.f32 %v1051_v33, %v1043_v22 }
 0x226   : > { %v1053_v36 = vpack.c.bf16 %v1052_v35, %v1052_v35 }
 0x228   : > { %1127 = vmatmul.bf16.vlgmr.msra.gmra.mxu1 %v1053_v36 }
 0x2a5   : > { %v1128_v38 = vpop.f32.mrf.mxu1 }
 0x2a6   : > { %v1129_v39 = vadd.f32 %v1128_v38, %v1070_v37 }
 0x2a8   : > { %v1132_v40 = vmul.f32 %v1129_v39, %v1129_v39 }
 0x2aa   : > { %v1133_v41 = vmul.f32 %v1132_v40, %v1129_v39 }
 0x2ac   : > { %v1134_v42 = vmul.f32 0.044715, %v1133_v41 }
 0x2ad   : > { %v1130_v43 = vpop.f32.mrf.mxu1 }
 0x2ae   : > { %v1135_v44 = vadd.f32 %v1134_v42, %v1129_v39 }
 0x2b0   : > { %v1136_v45 = vmul.f32 0.7978846, %v1135_v44 }
 0x2b2   : > { %1783 = vtanh.f32 %v1136_v45 }
 0x2b8   : > { %v1784_v46 = vpop.eup %1783 }
 0x2b9   : > { %v1138_v47 = vadd.f32 1.0, %v1784_v46 }
 0x2bb   : > { %v1139_v48 = vmul.f32 0.5, %v1138_v47 }
 0x2bd   : > { %v1140_v49 = vmul.f32 %v1139_v48, %v1129_v39 }
 0x2bf   : > { %1141 = vadd.xlane.f32.xlu0 %v1140_v49 }
 0x332   : > { %v1142_v51 = vpop.xlane.xlu0 %1141 }
 0x333   : > { %v1143_v52 = vmul.f32 0.03125, %v1142_v51 }
 0x335   : > { %v1144_v53 = vsub.f32 %v1140_v49, %v1143_v52 }
 0x337   : > { %v1150_v54 = vsel %vm1147_vm4, %v1144_v53, 0.0 }
 0x338   : > { %v1151_v55 = vmul.f32 %v1150_v54, %v1150_v54 }
 0x33a   : > { %1152 = vadd.xlane.f32.xlu0 %v1151_v55 }
 0x3ad   : > { %v1153_v56 = vpop.xlane.xlu0 %1152 }
 0x3ae   : > { %v1154_v57 = vmul.f32 0.03125, %v1153_v56 }
 0x3b0   : > { %v1155_v58 = vadd.f32 1e-05, %v1154_v57 }
 0x3b2   : > { %1785 = vrsqrt.f32 %v1155_v58  ;;  %vm1162_vm6 = vweird.f32 %v1155_v58 }
 0x3b8   : > { %v1786_v59 = vpop.eup %1785 }
 0x3b9   : > { %v1157_v60 = vmul.f32 %v1786_v59, %v1155_v58  ;;  %vm1163_vm5 = vweird.f32 %v1786_v59 }
 0x3ba   : > { %vm1164_vm7 = vmor %vm1162_vm6, %vm1163_vm5 }
 0x3bb   : > { %v1158_v62 = vmul.f32 %v1786_v59, %v1157_v60 }
 0x3bd   : > { %v1159_v63 = vmul.f32 0.5, %v1158_v62 }
 0x3bf   : > { %v1160_v0 = vsub.f32 1.5, %v1159_v63 }
 0x3c1   : > { %v1161_v15 = vmul.f32 %v1786_v59, %v1160_v0 }
 0x3c3   : > { %v1165_v2 = vsel %vm1164_vm7, %v1786_v59, %v1161_v15 }
 0x3c4   : > { %v1166_v3 = vmul.f32 %v1165_v2, %v1150_v54 }
 0x3c6   : > { %v1168_v5 = vmul.f32 %v1167_v1, %v1166_v3 }
 0x3c8   : > { %v1170_v6 = vadd.f32 %v1169_v4, %v1168_v5 }
 0x3ca   : > { %1171 = vst [vmem:[%s276_s10] sm:$0xff] %v1170_v6 }
 0x3cb   : > { %1874 = shalt.err (!%p1871_p8)
}
 0x3cc   : > { %1723 = dma.vmem_to_hbm [thread:$0]  (%p1996_p5), %s1186_s11, 128, %s1188_s12, %s1173_s25  }
 0x3cd PF: > { %p1740_p9 = scmp.ge.s32.totalorder %s1917_s24, 2  ;;  %s1199_s17 = sand.u32 1, %s1905_s21  }
 0x3ce   : > { %s1200_s20 = scalar_lea.sflag [#allocation4], %s1199_s17 }
 0x3cf   : > { %p1733_p10 = pnand %p1740_p9, %p2000_p6 }
 0x3d1   : > { %p1734_p11 = pneg %p1733_p10 }
 0x3d3   : > { %1900 = dma.done.wait (%p1734_p11), %s1200_s20, 128  }
 0x3d4   : > { %1902 = vsyncadd (%p1734_p11), %s1200_s20, 4294967168  ;;  %p18_p12 = scmp.ge.s32.totalorder %s1983_s27, 4   ;;  %s2211_s21 = smov %s1909_s22 }
 0x3d5   : > { %s2212_s22 = smov %s1913_s23  ;;  %s2213_s23 = smov %s1994_s30 }
 0x3d6   : > { %s2214_s24 = smov %s1983_s27  ;;  %20 = sbr.rel (!%p18_p12) target bundleno = 5 (0x5), region = 88 }
 0x3db   :  { %1206 = vsyncpa [#allocation3], 1 }
 0x3dc   :  { %1208 = vsyncpa [#allocation3 + $0x1], 1 }
 0x3dd   :  { %1209 = vsyncpa [#allocation6], 1 }
 0x3de   :  { %1210 = vsyncpa [#allocation4], 1 }
 0x3df   :  { %1212 = vsyncpa [#allocation4 + $0x1], 1 }

</bundles_post_ra>
